<compile_context>
chip_gen: v6e
topology: v6e:2x2x1
jax: 0.10.0
libtpu: 0.0.40
codegen_flags: <defaults>
</compile_context>

<pallas_src>
import functools
import math

import jax
import jax.numpy as jnp
from jax import lax
from jax.experimental import pallas as pl
from jax.experimental.pallas import tpu as pltpu

KH = KW = 3        # config['unet']['conv']['kernel_size'] = 3
STRIDE = 2         # DownSample passes stride=2, padding=0 explicitly
INIT_SCALE = 1.0   # assumed config['unet']['conv']['init_scale'] (dilation = 1)


def _downsample_kernel(xm_ref, xt_ref, w_ref, b_ref, o_ref, *,
                       tho, wo, ws, c, ho, zero_last_row_ky2, zero_last_col_kx2):
    """One (batch, output-row-tile) grid step.

    xm_ref: (1, tho, 2, ws, 2c)  main super-rows [r*tho, r*tho + tho)
    xt_ref: (1, 1, 1, ws, 2c)    halo super-row (parity 0 only)
    w_ref : (3, 2c, 2c)          fused per-ky weights [w(kx=0,1) | w(kx=2) on even lanes]
    b_ref : (1, c)               bias (f32)
    o_ref : (1, tho, wo, c)      output tile
    """
    c2 = 2 * c
    m = tho * ws
    f32 = jnp.float32

    p0 = xm_ref[0, :, 0].reshape(m, c2)           # padded rows 2*oy   (parity 0)
    p1 = xm_ref[0, :, 1].reshape(m, c2)           # padded rows 2*oy+1 (parity 1)
    hl = xt_ref[0, 0, 0]                          # (ws, c2) halo row  (parity 0)

    r01 = (jnp.dot(p0, w_ref[0], preferred_element_type=f32)
           + jnp.dot(p1, w_ref[1], preferred_element_type=f32))       # ky = 0, 1
    r2 = jnp.dot(p0, w_ref[2], preferred_element_type=f32)            # ky = 2 (pre-shift)
    rh = jnp.dot(hl, w_ref[2], preferred_element_type=f32)            # ky = 2, halo row

    # ky=2 row shift: output local row t uses r2 row t+1; last local row uses the halo.
    if tho > 1:
        r2 = pltpu.roll(r2, shift=m - ws, axis=0)   # XLU rotate == jnp.roll(r2, -ws, 0)
    r2 = r2.reshape(tho, ws, c2)
    t_idx = lax.broadcasted_iota(jnp.int32, (tho, 1, 1), 0)
    ky2 = jnp.where(t_idx == tho - 1, rh.reshape(1, ws, c2), r2)
    if zero_last_row_ky2:
        # Even H: the ky=2 taps of global output row Ho-1 read the zero pad row.
        g = t_idx + pl.program_id(1) * tho
        ky2 = jnp.where(g < ho - 1, ky2, 0.0)
    acc = r01.reshape(tho, ws, c2) + ky2

    # kx=2 column shift: output col j uses acc[:, j+1, c:2c] (flat sublane rotate).
    sh = pltpu.roll(acc.reshape(m, c2), shift=m - 1, axis=0).reshape(tho, ws, c2)
    kx2 = sh[..., c:]
    if zero_last_col_kx2:
        # Even W: the kx=2 tap of output col Wo-1 reads the zero pad column.
        w_idx = lax.broadcasted_iota(jnp.int32, (1, ws, 1), 1)
        kx2 = jnp.where(w_idx < ws - 1, kx2, 0.0)

    out = acc[..., :c] + kx2 + b_ref[...].astype(f32).reshape(1, 1, c)
    o_ref[0] = out[:, :wo, :].astype(o_ref.dtype)


def _pick_tile_rows(batch, ho, ws, c, in_item, out_item, budget_bytes):
    """Largest row tile whose working set fits the VMEM budget, capped so the
    grid keeps >= ~4 steps (both TensorCores busy under 'parallel' semantics)."""
    def vmem_cost(t):
        x_blk = t * 2 * ws * 2 * c * in_item * 2        # main input block, double-buffered
        halo = ws * 2 * c * in_item * 2                 # halo block, double-buffered
        wts = KH * (2 * c) * (2 * c) * in_item * 2      # fused weights, double-buffered
        out = t * ws * c * out_item * 2                 # output block, double-buffered
        live = t * ws * 2 * c * 4 * 5                   # f32 intermediates (r01, r2, acc, sh)
        return x_blk + halo + wts + out + live

    tile = 1
    for t in range(1, ho + 1):
        if vmem_cost(t) <= budget_bytes:
            tile = t
    min_steps = 4
    if batch * (-(-ho // tile)) < min_steps:
        want_tiles = min(ho, -(-min_steps // batch))
        tile = max(1, -(-ho // want_tiles))
    return tile


@functools.partial(jax.jit,
                   static_argnames=("compute_dtype", "tile_rows", "vmem_budget_bytes"))
def downsample(x_nchw, weight, bias, *, compute_dtype=jnp.bfloat16, tile_rows=None,
               vmem_budget_bytes=36 * 1024 * 1024):
    """Forward of DownSample: F.pad(x, (0,1,0,1)) then Conv2d(3x3, stride=2, pad=0).

    weight: (ky, kx, cin, cout);  bias: (cout,).
    """
    B, C, H, W = x_nchw.shape
    Ho = (H - 2) // 2 + 1          # = ((H + 1) - 3) // 2 + 1
    Wo = (W - 2) // 2 + 1
    Hs = -(-H // 2)                # super-rows of the regrouped layout (ceil(H/2))
    Ws = -(-W // 2)
    out_dtype = x_nchw.dtype
    cdt = jnp.dtype(out_dtype) if compute_dtype is None else jnp.dtype(compute_dtype)

    # NCHW -> NHWC (interface plumbing only) + compute-dtype cast.
    x = jnp.transpose(x_nchw, (0, 2, 3, 1)).astype(cdt)
    pad_h, pad_w = 2 * Hs - H, 2 * Ws - W              # 0 for even dims: NO pad HBM pass
    if pad_h or pad_w:
        x = jnp.pad(x, ((0, 0), (0, pad_h), (0, pad_w), (0, 0)))
    # Free row-major regroup: every conv tap is a contiguous static slice.
    xr = x.reshape(B, Hs, 2, Ws, 2 * C)

    # Fused per-ky weights: cols 0:C carry the (kx=0, kx=1) pair (rows ordered
    # (kx, cin) to match the 2C lane layout), cols C:2C carry kx=2 applied to
    # the even-parity lane half (read out with a one-super-col shift).
    w_pair = weight[:, 0:2].reshape(KH, 2 * C, C)
    w_shift = jnp.concatenate(
        [weight[:, 2], jnp.zeros((KH, C, C), weight.dtype)], axis=1)
    w_cat = jnp.concatenate([w_pair, w_shift], axis=2).astype(cdt)     # (3, 2C, 2C)
    b2d = bias.reshape(1, C).astype(jnp.float32)

    if tile_rows is None:
        tile_rows = _pick_tile_rows(B, Ho, Ws, C, cdt.itemsize,
                                    jnp.dtype(out_dtype).itemsize, vmem_budget_bytes)
    tile_rows = max(1, min(int(tile_rows), Ho))
    n_tiles = -(-Ho // tile_rows)                      # cdiv; partial tiles are masked

    kernel = functools.partial(
        _downsample_kernel, tho=tile_rows, wo=Wo, ws=Ws, c=C, ho=Ho,
        zero_last_row_ky2=(H % 2 == 0), zero_last_col_kx2=(W % 2 == 0))

    flops = 2 * B * Ho * Wo * KH * KW * C * C
    bytes_accessed = (B * Hs * 2 * Ws * 2 * C * cdt.itemsize
                      + KH * 2 * C * 2 * C * cdt.itemsize + C * 4
                      + B * Ho * Wo * C * jnp.dtype(out_dtype).itemsize)

    out_nhwc = pl.pallas_call(
        kernel,
        out_shape=jax.ShapeDtypeStruct((B, Ho, Wo, C), out_dtype),
        grid=(B, n_tiles),
        in_specs=[
            # main row tile: super-rows [r*tile_rows, (r+1)*tile_rows)
            pl.BlockSpec((1, tile_rows, 2, Ws, 2 * C), lambda b, r: (b, r, 0, 0, 0)),
            # 1-super-row, parity-0-only halo (clamped; invalid halos are masked in-kernel)
            pl.BlockSpec((1, 1, 1, Ws, 2 * C),
                         lambda b, r: (b, jnp.minimum((r + 1) * tile_rows, Hs - 1),
                                       0, 0, 0)),
            pl.BlockSpec((KH, 2 * C, 2 * C), lambda b, r: (0, 0, 0)),
            pl.BlockSpec((1, C), lambda b, r: (0, 0)),
        ],
        out_specs=pl.BlockSpec((1, tile_rows, Wo, C), lambda b, r: (b, r, 0, 0)),
        compiler_params=pltpu.CompilerParams(
            dimension_semantics=("parallel", "parallel"),
            vmem_limit_bytes=48 * 1024 * 1024),
        cost_estimate=pl.CostEstimate(flops=flops, transcendentals=0,
                                      bytes_accessed=int(bytes_accessed)),
    )(xr, xr, w_cat, b2d)

    return jnp.transpose(out_nhwc, (0, 3, 1, 2))       # back to NCHW


def init_params(key, channels):
    # nn.init.xavier_uniform_(conv.weight, gain=init_scale**2); nn.init.zeros_(bias)
    fan_in = channels * KH * KW
    fan_out = channels * KH * KW
    gain = INIT_SCALE ** 2
    bound = gain * math.sqrt(6.0 / (fan_in + fan_out))
    weight = jax.random.uniform(key, (KH, KW, channels, channels),
                                jnp.float32, -bound, bound)  # (ky, kx, cin, cout)
    bias = jnp.zeros((channels,), jnp.float32)
    return weight, bias


if __name__ == "__main__":
    key = jax.random.PRNGKey(0)
    k_x, k_w, k_b, k_x2 = jax.random.split(key, 4)

    B, C, H, W = 2, 4, 16, 16
    x = jax.random.normal(k_x, (B, C, H, W), jnp.float32)
    weight, _ = init_params(k_w, C)
    bias = 0.1 * jax.random.normal(k_b, (C,), jnp.float32)   # exercise the bias add

    def conv_ref(xin, w, b):
        # Pure-JAX reference: pad (0,1,0,1) + VALID stride-2 conv
        # (same semantics as F.pad + nn.Conv2d(stride=2, padding=0)).
        xpad = jnp.pad(xin, ((0, 0), (0, 0), (0, 1), (0, 1)))
        w_oihw = jnp.transpose(w, (3, 2, 0, 1))
        y = jax.lax.conv_general_dilated(
            xpad, w_oihw, window_strides=(STRIDE, STRIDE), padding="VALID",
            dimension_numbers=("NCHW", "OIHW", "NCHW"))
        return y + b.reshape(1, -1, 1, 1)

    ref = conv_ref(x, weight, bias)
    Ho, Wo = ref.shape[2], ref.shape[3]

    # 1) Default path: bf16 compute, auto tile size (2 row tiles per batch
    #    -> exercises the halo DMA and the even-H last-row mask).
    out = jax.block_until_ready(downsample(x, weight, bias))
    assert out.shape == (B, C, Ho, Wo)
    assert jnp.allclose(out.astype(jnp.float32), ref, atol=5e-2, rtol=5e-2), \
        "bf16 path mismatch"

    # 2) f32 compute with a tile size that does NOT divide Ho (partial-tile path).
    out32 = jax.block_until_ready(
        downsample(x, weight, bias, compute_dtype=jnp.float32, tile_rows=3))
    assert jnp.allclose(out32, ref, atol=1e-4, rtol=1e-4), \
        "f32 partial-tile path mismatch"

    # 3) Odd spatial size (falls back to a 1-row/1-col pad; halo row is real data).
    H2 = W2 = 15
    x2 = jax.random.normal(k_x2, (B, C, H2, W2), jnp.float32)
    ref2 = conv_ref(x2, weight, bias)
    out2 = jax.block_until_ready(
        downsample(x2, weight, bias, compute_dtype=jnp.float32))
    assert out2.shape == ref2.shape
    assert jnp.allclose(out2, ref2, atol=1e-4, rtol=1e-4), "odd-size path mismatch"

    print("KERNEL_OK")
</pallas_src>

<mosaic_0001>
module attributes {stable_mosaic.version = 11 : i64} {
  func.func @_downsample_kernel(%arg0: i32, %arg1: i32, %arg2: memref<1x4x2x8x8xbf16, #tpu.memory_space<vmem>>, %arg3: memref<1x1x1x8x8xbf16, #tpu.memory_space<vmem>>, %arg4: memref<3x8x8xbf16, #tpu.memory_space<vmem>>, %arg5: memref<1x4xf32, #tpu.memory_space<vmem>>, %arg6: memref<1x4x8x4xf32, #tpu.memory_space<vmem>>) attributes {dimension_semantics = [#tpu.dimension_semantics<parallel>, #tpu.dimension_semantics<parallel>], iteration_bounds = array<i64: 2, 2>, scalar_prefetch = 0 : i64, scratch_operands = 0 : i64, tpu.core_type = #tpu.core_type<tc>, window_params = [{transform_indices = @transform_0, window_bounds = array<i64: 1, 4, 2, 8, 8>}, {transform_indices = @transform_1, window_bounds = array<i64: 1, 1, 1, 8, 8>}, {pipeline_mode = #tpu.pipeline_mode<synchronous>, transform_indices = @transform_2, window_bounds = array<i64: 3, 8, 8>}, {pipeline_mode = #tpu.pipeline_mode<synchronous>, transform_indices = @transform_3, window_bounds = array<i64: 1, 4>}, {transform_indices = @transform_4, window_bounds = array<i64: 1, 4, 8, 4>}]} {
    %c0 = arith.constant 0 : index
    %c0_0 = arith.constant 0 : index
    %c0_1 = arith.constant 0 : index
    %c0_2 = arith.constant 0 : index
    %c0_3 = arith.constant 0 : index
    %0 = vector.load %arg2[%c0, %c0_0, %c0_1, %c0_2, %c0_3] : memref<1x4x2x8x8xbf16, #tpu.memory_space<vmem>>, vector<1x4x1x8x8xbf16>
    %1 = vector.shape_cast %0 : vector<1x4x1x8x8xbf16> to vector<4x8x8xbf16>
    %2 = vector.shape_cast %1 : vector<4x8x8xbf16> to vector<32x8xbf16>
    %c0_4 = arith.constant 0 : index
    %c0_5 = arith.constant 0 : index
    %c1 = arith.constant 1 : index
    %c0_6 = arith.constant 0 : index
    %c0_7 = arith.constant 0 : index
    %3 = vector.load %arg2[%c0_4, %c0_5, %c1, %c0_6, %c0_7] : memref<1x4x2x8x8xbf16, #tpu.memory_space<vmem>>, vector<1x4x1x8x8xbf16>
    %4 = vector.shape_cast %3 : vector<1x4x1x8x8xbf16> to vector<4x8x8xbf16>
    %5 = vector.shape_cast %4 : vector<4x8x8xbf16> to vector<32x8xbf16>
    %c0_8 = arith.constant 0 : index
    %c0_9 = arith.constant 0 : index
    %c0_10 = arith.constant 0 : index
    %c0_11 = arith.constant 0 : index
    %c0_12 = arith.constant 0 : index
    %6 = vector.load %arg3[%c0_8, %c0_9, %c0_10, %c0_11, %c0_12] : memref<1x1x1x8x8xbf16, #tpu.memory_space<vmem>>, vector<1x1x1x8x8xbf16>
    %7 = vector.shape_cast %6 : vector<1x1x1x8x8xbf16> to vector<8x8xbf16>
    %c0_13 = arith.constant 0 : index
    %c0_14 = arith.constant 0 : index
    %c0_15 = arith.constant 0 : index
    %8 = vector.load %arg4[%c0_13, %c0_14, %c0_15] : memref<3x8x8xbf16, #tpu.memory_space<vmem>>, vector<1x8x8xbf16>
    %9 = vector.shape_cast %8 : vector<1x8x8xbf16> to vector<8x8xbf16>
    %cst = arith.constant dense<0.000000e+00> : vector<32x8xf32>
    %10 = tpu.matmul %2, %9, %cst {dimension_numbers = #tpu.dot_dimension_numbers<[1], [0], [0], [1], [0, 0, 1, 1], [], []>} : vector<32x8xbf16>, vector<8x8xbf16>, vector<32x8xf32> -> vector<32x8xf32>
    %c1_16 = arith.constant 1 : index
    %c0_17 = arith.constant 0 : index
    %c0_18 = arith.constant 0 : index
    %11 = vector.load %arg4[%c1_16, %c0_17, %c0_18] : memref<3x8x8xbf16, #tpu.memory_space<vmem>>, vector<1x8x8xbf16>
    %12 = vector.shape_cast %11 : vector<1x8x8xbf16> to vector<8x8xbf16>
    %cst_19 = arith.constant dense<0.000000e+00> : vector<32x8xf32>
    %13 = tpu.matmul %5, %12, %cst_19 {dimension_numbers = #tpu.dot_dimension_numbers<[1], [0], [0], [1], [0, 0, 1, 1], [], []>} : vector<32x8xbf16>, vector<8x8xbf16>, vector<32x8xf32> -> vector<32x8xf32>
    %14 = arith.addf %10, %13 : vector<32x8xf32>
    %c2 = arith.constant 2 : index
    %c0_20 = arith.constant 0 : index
    %c0_21 = arith.constant 0 : index
    %15 = vector.load %arg4[%c2, %c0_20, %c0_21] : memref<3x8x8xbf16, #tpu.memory_space<vmem>>, vector<1x8x8xbf16>
    %16 = vector.shape_cast %15 : vector<1x8x8xbf16> to vector<8x8xbf16>
    %cst_22 = arith.constant dense<0.000000e+00> : vector<32x8xf32>
    %17 = tpu.matmul %2, %16, %cst_22 {dimension_numbers = #tpu.dot_dimension_numbers<[1], [0], [0], [1], [0, 0, 1, 1], [], []>} : vector<32x8xbf16>, vector<8x8xbf16>, vector<32x8xf32> -> vector<32x8xf32>
    %c2_23 = arith.constant 2 : index
    %c0_24 = arith.constant 0 : index
    %c0_25 = arith.constant 0 : index
    %18 = vector.load %arg4[%c2_23, %c0_24, %c0_25] : memref<3x8x8xbf16, #tpu.memory_space<vmem>>, vector<1x8x8xbf16>
    %19 = vector.shape_cast %18 : vector<1x8x8xbf16> to vector<8x8xbf16>
    %cst_26 = arith.constant dense<0.000000e+00> : vector<8x8xf32>
    %20 = tpu.matmul %7, %19, %cst_26 {dimension_numbers = #tpu.dot_dimension_numbers<[1], [0], [0], [1], [0, 0, 1, 1], [], []>} : vector<8x8xbf16>, vector<8x8xbf16>, vector<8x8xf32> -> vector<8x8xf32>
    %c24_i32 = arith.constant 24 : i32
    %21 = tpu.dynamic_rotate %17 by %c24_i32 dim 0 : vector<32x8xf32>, i32 -> vector<32x8xf32>
    %22 = vector.shape_cast %21 : vector<32x8xf32> to vector<4x8x8xf32>
    %23 = tpu.iota {dimensions = array<i32: 0>} : vector<4x1x1xi32>
    %c3_i32 = arith.constant 3 : i32
    %24 = vector.broadcast %c3_i32 : i32 to vector<4x1x1xi32>
    %25 = arith.cmpi eq, %23, %24 : vector<4x1x1xi32>
    %26 = vector.shape_cast %20 : vector<8x8xf32> to vector<1x8x8xf32>
    %27 = vector.shape_cast %25 : vector<4x1x1xi1> to vector<4x1x1xi1>
    %28 = vector.broadcast %27 : vector<4x1x1xi1> to vector<4x8x8xi1>
    %29 = vector.shape_cast %26 : vector<1x8x8xf32> to vector<1x8x8xf32>
    %30 = vector.broadcast %29 : vector<1x8x8xf32> to vector<4x8x8xf32>
    %31 = arith.select %28, %30, %22 : vector<4x8x8xi1>, vector<4x8x8xf32>
    %c4_i32 = arith.constant 4 : i32
    %32 = arith.muli %arg1, %c4_i32 : i32
    %33 = vector.broadcast %32 : i32 to vector<4x1x1xi32>
    %34 = arith.addi %23, %33 : vector<4x1x1xi32>
    %c7_i32 = arith.constant 7 : i32
    %35 = vector.broadcast %c7_i32 : i32 to vector<4x1x1xi32>
    %36 = arith.cmpi slt, %34, %35 : vector<4x1x1xi32>
    %cst_27 = arith.constant 0.000000e+00 : f32
    %37 = vector.shape_cast %36 : vector<4x1x1xi1> to vector<4x1x1xi1>
    %38 = vector.broadcast %37 : vector<4x1x1xi1> to vector<4x8x8xi1>
    %39 = vector.broadcast %cst_27 : f32 to vector<4x8x8xf32>
    %40 = arith.select %38, %31, %39 : vector<4x8x8xi1>, vector<4x8x8xf32>
    %41 = vector.shape_cast %14 : vector<32x8xf32> to vector<4x8x8xf32>
    %42 = arith.addf %41, %40 : vector<4x8x8xf32>
    %43 = vector.shape_cast %42 : vector<4x8x8xf32> to vector<32x8xf32>
    %c31_i32 = arith.constant 31 : i32
    %44 = tpu.dynamic_rotate %43 by %c31_i32 dim 0 : vector<32x8xf32>, i32 -> vector<32x8xf32>
    %45 = vector.shape_cast %44 : vector<32x8xf32> to vector<4x8x8xf32>
    %46 = vector.extract_strided_slice %45 {offsets = [0, 0, 4], sizes = [4, 8, 4], strides = [1, 1, 1]} : vector<4x8x8xf32> to vector<4x8x4xf32>
    %47 = tpu.iota {dimensions = array<i32: 1>} : vector<1x8x1xi32>
    %c7_i32_28 = arith.constant 7 : i32
    %48 = vector.broadcast %c7_i32_28 : i32 to vector<1x8x1xi32>
    %49 = arith.cmpi slt, %47, %48 : vector<1x8x1xi32>
    %cst_29 = arith.constant 0.000000e+00 : f32
    %50 = vector.shape_cast %49 : vector<1x8x1xi1> to vector<1x8x1xi1>
    %51 = vector.broadcast %50 : vector<1x8x1xi1> to vector<4x8x4xi1>
    %52 = vector.broadcast %cst_29 : f32 to vector<4x8x4xf32>
    %53 = arith.select %51, %46, %52 : vector<4x8x4xi1>, vector<4x8x4xf32>
    %54 = vector.extract_strided_slice %42 {offsets = [0, 0, 0], sizes = [4, 8, 4], strides = [1, 1, 1]} : vector<4x8x8xf32> to vector<4x8x4xf32>
    %55 = arith.addf %54, %53 : vector<4x8x4xf32>
    %c0_30 = arith.constant 0 : index
    %c0_31 = arith.constant 0 : index
    %56 = vector.load %arg5[%c0_30, %c0_31] : memref<1x4xf32, #tpu.memory_space<vmem>>, vector<1x4xf32>
    %57 = vector.shape_cast %56 : vector<1x4xf32> to vector<1x1x4xf32>
    %58 = vector.broadcast %57 : vector<1x1x4xf32> to vector<4x8x4xf32>
    %59 = arith.addf %55, %58 : vector<4x8x4xf32>
    %c0_32 = arith.constant 0 : index
    %c0_33 = arith.constant 0 : index
    %c0_34 = arith.constant 0 : index
    %c0_35 = arith.constant 0 : index
    %60 = vector.load %arg6[%c0_32, %c0_33, %c0_34, %c0_35] : memref<1x4x8x4xf32, #tpu.memory_space<vmem>>, vector<1x4x8x4xf32>
    %61 = vector.shape_cast %60 : vector<1x4x8x4xf32> to vector<4x8x4xf32>
    %62 = vector.shape_cast %59 : vector<4x8x4xf32> to vector<1x4x8x4xf32>
    tpu.vector_store %arg6[%c0_32, %c0_33, %c0_34, %c0_35], %62 {strides = array<i32>} : memref<1x4x8x4xf32, #tpu.memory_space<vmem>>, vector<1x4x8x4xf32>,
    return
  }
  func.func @transform_0(%arg0: i32, %arg1: i32) -> (i32, i32, i32, i32, i32) {
    %c0_i32 = arith.constant 0 : i32
    %c0_i32_0 = arith.constant 0 : i32
    %c0_i32_1 = arith.constant 0 : i32
    %c0_i32_2 = arith.constant 0 : i32
    return %arg0, %arg1, %c0_i32, %c0_i32_0, %c0_i32_1 : i32, i32, i32, i32, i32
  }
  func.func @transform_1(%arg0: i32, %arg1: i32) -> (i32, i32, i32, i32, i32) {
    %c1_i32 = arith.constant 1 : i32
    %0 = arith.addi %arg1, %c1_i32 : i32
    %c4_i32 = arith.constant 4 : i32
    %1 = arith.muli %0, %c4_i32 : i32
    %c7_i32 = arith.constant 7 : i32
    %2 = arith.minsi %1, %c7_i32 : i32
    %c0_i32 = arith.constant 0 : i32
    %c0_i32_0 = arith.constant 0 : i32
    %c0_i32_1 = arith.constant 0 : i32
    %c0_i32_2 = arith.constant 0 : i32
    return %arg0, %2, %c0_i32, %c0_i32_0, %c0_i32_1 : i32, i32, i32, i32, i32
  }
  func.func @transform_2(%arg0: i32, %arg1: i32) -> (i32, i32, i32) {
    %c0_i32 = arith.constant 0 : i32
    %c0_i32_0 = arith.constant 0 : i32
    %c0_i32_1 = arith.constant 0 : i32
    %c0_i32_2 = arith.constant 0 : i32
    return %c0_i32, %c0_i32_0, %c0_i32_1 : i32, i32, i32
  }
  func.func @transform_3(%arg0: i32, %arg1: i32) -> (i32, i32) {
    %c0_i32 = arith.constant 0 : i32
    %c0_i32_0 = arith.constant 0 : i32
    %c0_i32_1 = arith.constant 0 : i32
    return %c0_i32, %c0_i32_0 : i32, i32
  }
  func.func @transform_4(%arg0: i32, %arg1: i32) -> (i32, i32, i32, i32) {
    %c0_i32 = arith.constant 0 : i32
    %c0_i32_0 = arith.constant 0 : i32
    %c0_i32_1 = arith.constant 0 : i32
    return %arg0, %arg1, %c0_i32, %c0_i32_0 : i32, i32, i32, i32
  }
}

</mosaic_0001>

<bundles_post_ra>
// kernel: downsample.1
= control target key start
LH: loop header
LB: loop body
LE: loop exit
PB: predicated region body
PF: predicated region fallthrough
CT: control target
= control target key end

     0   :  { %s948_s15 = smov 0   ;;  %s950_s16 = smov 0   ;;  %s1057_s0 = inlined_call_operand.vmem [shape: bf16[2,8,2,8,8], index: 0, kind: input, shape index: {}, may-alias: {0,1}]   ;;  %s1058_s1 = inlined_call_operand.vmem [shape: bf16[2,8,2,8,8], index: 1, kind: input, shape index: {}, may-alias: {0,1}]   ;;  %s1059_s2 = inlined_call_operand.vmem [shape: bf16[3,8,8], index: 2, kind: input, shape index: {}]   ;;  %s1060_s3 = inlined_call_operand.vmem [shape: f32[1,4], index: 3, kind: input, shape index: {}]   ;;  %s1061_s4 = inlined_call_operand.vmem [shape: f32[2,8,8,4], index: 4, kind: output, shape index: {}]  }
   0x1   :  { %s952_s17 = smov 0   ;;  %s954_s18 = smov 0  }
   0x2   :  { %s956_s19 = smov 0  }
   0x3 LB: > { %s23_s20 = sadd.s32 1, %s910_s17  ;;  %s26_s21 = sadd.s32 1, %s914_s18  ;;  %s918_s19 = sphi %s956_s19, %s14_s19   ;;  %s914_s18 = sphi %s954_s18, %s1066_s18   ;;  %s910_s17 = sphi %s952_s17, %s1065_s17   ;;  %s906_s16 = sphi %s950_s16, %s1064_s16   ;;  %s902_s15 = sphi %s948_s15, %s1063_s15  }
   0x4   : > { %p24_p0 = scmp.ge.s32.totalorder %s23_s20, 2  ;;  %p753_p1 = scmp.ge.s32.totalorder %s918_s19, 1 }
   0x5   : > { %p216_p2 = scmp.lt.s32.totalorder %s918_s19, 5 }
   0x6   : > { %s1068_s20 = smov (%p24_p0, %s23_s20), 0  ;;  %s1070_s21 = smov (!%p24_p0, %s26_s21), %s914_s18 }
   0x7   : > { %p217_p3 = pnand %p753_p1, %p216_p2  ;;  %p28_p4 = scmp.ge.s32.totalorder %s1070_s21, 2 }
   0x8   : > { %s984_s26 = sshll.u32 (!%p217_p3), %s902_s15, 2  ;;  %p265_p5 = scmp.lt.s32.totalorder (!%p217_p3), %s906_s16, 1 }
   0x9   : > { %s1072_s21 = smov (%p28_p4, %s1070_s21), 0  ;;  %220 = sbr.rel (%p217_p3) target bundleno = 361 (0x169), region = 36 }
   0xa   : > { %p267_p6 = scmp.lt.s32.totalorder (!%p217_p3), %s984_s26, 7  ;;  %s794_s6 = sadd.s32 (!%p217_p3), 4, %s984_s26 }
   0xb   : > { %p1007_p7 = scmp.lt.s32.totalorder (!%p217_p3), %s794_s6, 7  ;;  %s922_s25 = smov (!%p217_p3), 124  }
   0xe   : > { %v772_v0 = vld [vmem:[%s1059_s2 + $0x4] sm:$0xf]  ;;  %vm333_vm0 = vcmask 1043456   ;;  %v313_v1 = vld [vmem:[%s1059_s2] sm:$0xf]  ;;  %s1074_s16 = smov (!%p265_p5, %s906_s16), 1  ;;  %v556_v13 = vstv %s984_s26  ;;  %v584_v24 = vlaneseq }
   0xf   : > { %830 = vmatprep.subr.msk.bf16.mxu0 %vm333_vm0, %v772_v0  ;;  %v335_v2 = vsel %vm333_vm0, %v772_v0, 0  ;;  %831 = vmatprep.subr.msk.bf16.mxu1 %vm333_vm0, %v313_v1  ;;  %v403_v3 = vsel %vm333_vm0, %v313_v1, 0  ;;  %v781_v4 = vld [vmem:[%s1059_s2 + $0x8] sm:$0xf]  ;;  %v920_v5 = vmov 0.0   ;;  %s998_s29 = scalar_select %p267_p6, %s984_s26, 7 }
  0x10   : > { %807 = vmatpush3.bf16.msra.mxu0 %v335_v2  ;;  %813 = vmatpush3.bf16.msra.mxu1 %v403_v3  ;;  %s756_s30 = sshll.u32 %s1074_s16, 4  ;;  %vm326_vm1 = vcmask 64512   ;;  %v457_v6 = vsel %vm333_vm0, %v781_v4, 0  ;;  %s1076_s6 = smov (!%p1007_p7, %s794_s6), 7  ;;  %vm921_vm2 = vmmov 0   ;;  %v559_v17 = vadd.s32 3, %v556_v13 }
  0x11   : > { %832 = vmatprep.subr.msk.bf16.mxu0 %vm333_vm0, %v781_v4  ;;  %824 = vmatprep.subr.bf16.mxu1 %v920_v5  ;;  %s755_s5 = sshll.u32 %s998_s29, 1  ;;  %s1078_s6 = smov (!%p1007_p7, %s1076_s6), 7  ;;  %v557_v19 = vadd.s32 1, %v556_v13  ;;  %v558_v22 = vadd.s32 2, %v556_v13  ;;  %v585_v33 = vshrl.u32 %v584_v24, 7  ;;  %vm560_vm6 = vcmp.lt.s32.totalorder %v556_v13, 7 }
  0x12   : > { %s271_s7 = sadd.s32 %s756_s30, %s755_s5  ;;  %s762_s13 = sshll.u32 %s1078_s6, 1  ;;  %vm563_vm3 = vcmp.lt.s32.totalorder %v559_v17, 7  ;;  %v786_v58 = vld [vmem:[%s1060_s3] ss:$0 sm:$0xff]  ;;  %vm628_vm8 = vcmask 31744  }
  0x13   : > { %s757_s8 = sshll.u32 %s271_s7, 2  ;;  %s285_s14 = sadd.s32 %s762_s13, %s756_s30  ;;  %vm561_vm4 = vcmp.lt.s32.totalorder %v557_v19, 7  ;;  %vm562_vm5 = vcmp.lt.s32.totalorder %v558_v22, 7  ;;  %vm586_vm7 = vcmp.lt.s32.totalorder %v585_v33, 7 }
  0x14   : > { %s273_s11 = scalar_lea.vmem %s1057_s0, %s757_s8  ;;  %s764_s15 = sshll.u32 %s285_s14, 2 }
  0x15   : > { %v876_v7 = vld [vmem:[%s273_s11 + $0x4] ss:$8 sps:$4 sm:$0xff]   ;;  %v877_v8 = vld [vmem:[%s273_s11] ss:$8 sps:$4 sm:$0xff]   ;;  %v878_v9 = vld [vmem:[%s273_s11 + $0x14] ss:$8 sps:$4 sm:$0xff]   ;;  %s287_s24 = scalar_lea.vmem %s1058_s1, %s764_s15 }
  0x16   : > { %808 = vmatprep.mubr.msk.bf16.mxu0 %vm326_vm1, %v876_v7  ;;  %814 = vmatprep.mubr.msk.bf16.mxu1 %vm326_vm1, %v877_v8  ;;  %v879_v10 = vld [vmem:[%s273_s11 + $0x10] ss:$8 sps:$4 sm:$0xff]   ;;  %v312_v11 = vld [vmem:[%s287_s24] sm:$0xf]  ;;  %s766_s26 = sshll.u32 %s1074_s16, 3 }
  0x17   : > { %809 = vmatmul.mubr.msk.bf16.vlgmr.msra.gmra.mxu0 %vm326_vm1, %v878_v9  ;;  %815 = vmatmul.mubr.msk.bf16.vlgmr.msra.gmra.mxu1 %vm326_vm1, %v879_v10  ;;  %s298_s27 = sadd.s32 %s766_s26, %s998_s29 }
  0x18   : > { %819 = vmatpush3.bf16.msra.mxu0 %v457_v6  ;;  %825 = vmatpush3.bf16.msra.mxu1 %v457_v6  ;;  %s767_s28 = sshll.u32 %s298_s27, 3 }
  0x19   : > { %820 = vmatprep.mubr.msk.bf16.mxu0 %vm326_vm1, %v877_v8  ;;  %826 = vmatprep.mubr.msk.bf16.mxu1 %vm921_vm2, %v920_v5  ;;  %s300_s8 = scalar_lea.vmem %s1061_s4, %s767_s28 }
  0x1f   : > { %821 = vmatmul.mubr.msk.bf16.vlgmr.msra.gmra.mxu0 %vm326_vm1, %v879_v10  ;;  %827 = vmatmul.mubr.msk.bf16.vlgmr.msra.gmra.mxu1 %vm326_vm1, %v312_v11 }
  0xd7   : > { %v810_v12 = vpop.f32.mrf.mxu0  ;;  %v816_v14 = vpop.f32.mrf.mxu1 }
  0xd8   : > { %v448_v34 = vadd.f32 %v816_v14, %v810_v12 }
  0xd9   : > { %v371_v15 = vpop.f32.mrf.mxu0  ;;  %v439_v16 = vpop.f32.mrf.mxu1 }
  0xda   : > { %v440_v39 = vadd.f32 %v439_v16, %v371_v15 }
  0xdb   : > { %v811_v18 = vpop.f32.mrf.mxu0  ;;  %v817_v20 = vpop.f32.mrf.mxu1 }
  0xdc   : > { %v451_v27 = vadd.f32 %v817_v20, %v811_v18 }
  0xdd   : > { %v374_v21 = vpop.f32.mrf.mxu0  ;;  %v442_v23 = vpop.f32.mrf.mxu1 }
  0xde   : > { %v443_v28 = vadd.f32 %v442_v23, %v374_v21 }
  0xdf   : > { %v822_v25 = vpop.f32.mrf.mxu0  ;;  %v545_v26 = vpop.f32.mrf.mxu1 }
  0xe0   : > { %v575_v29 = vsel %vm563_vm3, %v545_v26, 0.0  ;;  %v573_v31 = vsel %vm561_vm4, %v822_v25, 0.0 }
  0xe1   : > { %v493_v30 = vpop.f32.mrf.mxu0  ;;  %v828_v32 = vpop.f32.mrf.mxu1  ;;  %v579_v35 = vadd.f32 %v575_v29, %v451_v27  ;;  %v577_v40 = vadd.f32 %v573_v31, %v443_v28 }
  0xe3   : > { %v823_v36 = vpop.f32.mrf.mxu0  ;;  %v548_v38 = vpop.f32.mrf.mxu1  ;;  %v583_v45 = vrot.slane %v579_v35, 1  ;;  %v581_v48 = vrot.slane %v577_v40, 1 }
  0xe4   : > { %v574_v37 = vsel %vm562_vm5, %v823_v36, 0.0 }
  0xe5   : > { %v578_v41 = vadd.f32 %v574_v37, %v448_v34  ;;  %v496_v42 = vpop.f32.mrf.mxu0  ;;  %v829_v44 = vpop.f32.mrf.mxu1 }
  0xe6   : > { %v572_v43 = vsel %vm560_vm6, %v496_v42, 0.0 }
  0xe7   : > { %v582_v46 = vrot.slane %v578_v41, 1  ;;  %v576_v47 = vadd.f32 %v572_v43, %v440_v39 }
  0xe9   : > { %v580_v49 = vrot.slane %v576_v47, 1  ;;  %v587_v50 = vsel %vm586_vm7, %v582_v46, %v583_v45  ;;  %v588_v55 = vsel %vm586_vm7, %v581_v48, %v582_v46 }
  0xea   : > { %v595_v51 = vsel %vm586_vm7, %v587_v50, 0.0  ;;  %v594_v57 = vsel %vm586_vm7, %v588_v55, 0.0 }
  0xeb   : > { %605 = vrot.lane.b32.xlu1 %v595_v51, %s922_s25  ;;  %v589_v52 = vsel %vm586_vm7, %v580_v49, %v581_v48  ;;  %v590_v53 = vsel %vm586_vm7, %v583_v45, %v580_v49 }
  0xec   : > { %v593_v54 = vsel %vm586_vm7, %v589_v52, 0.0  ;;  %v596_v56 = vsel %vm586_vm7, %v590_v53, 0.0 }
  0xed   : > { %601 = vrot.lane.b32.xlu0 %v593_v54, %s922_s25 }
  0xef   : > { %607 = vrot.lane.b32.xlu1 %v596_v56, %s922_s25 }
  0xf1   : > { %603 = vrot.lane.b32.xlu0 %v594_v57, %s922_s25 }
 0x15d   : > { %v606_v59 = vpop.permute.xlu1 %605 }
 0x15e   : > { %v615_v60 = vadd.f32 %v606_v59, %v578_v41 }
 0x15f   : > { %v602_v61 = vpop.permute.xlu0 %601 }
 0x160   : > { %v626_v62 = vadd.f32 %v786_v58, %v615_v60  ;;  %v613_v63 = vadd.f32 %v602_v61, %v576_v47 }
 0x161   : > { %v608_v0 = vpop.permute.xlu1 %607 }
 0x162   : > { %631 = vst.msk [vmem:[%s300_s8 + $0x10] sm:$0xff] %vm628_vm8, %v626_v62  ;;  %v624_v1 = vadd.f32 %v786_v58, %v613_v63  ;;  %v616_v2 = vadd.f32 %v608_v0, %v579_v35 }
 0x163   : > { %v604_v3 = vpop.permute.xlu0 %603 }
 0x164   : > { %629 = vst.msk [vmem:[%s300_s8] sm:$0xff] %vm628_vm8, %v624_v1  ;;  %v627_v4 = vadd.f32 %v786_v58, %v616_v2  ;;  %v614_v5 = vadd.f32 %v604_v3, %v577_v40 }
 0x166   : > { %632 = vst.msk [vmem:[%s300_s8 + $0x18] sm:$0xff] %vm628_vm8, %v627_v4  ;;  %v625_v6 = vadd.f32 %v786_v58, %v614_v5 }
 0x168   : > { %630 = vst.msk [vmem:[%s300_s8 + $0x8] sm:$0xff] %vm628_vm8, %v625_v6 }
 0x169 PF: > { %s14_s19 = sadd.s32 1, %s918_s19   ;;  %s1063_s15 = smov %s910_s17 }
 0x16a   : > { %p11_p8 = scmp.ge.s32.totalorder %s14_s19, 6   ;;  %s1064_s16 = smov %s914_s18 }
 0x16b   : > { %s1065_s17 = smov %s1068_s20  ;;  %s1066_s18 = smov %s1072_s21 }
 0x16c   :  { %13 = sbr.rel (!%p11_p8) target bundleno = 3 (0x3), region = 72 }

</bundles_post_ra>
